<compile_context>
chip_gen: v6e
topology: v6e:2x2x1
jax: 0.10.0
libtpu: 0.0.40
codegen_flags: <defaults>
</compile_context>

<pallas_src>
import functools

import jax
import jax.numpy as jnp
from jax import lax
from jax.experimental import pallas as pl
from jax.experimental.pallas import tpu as pltpu


def _spiking_kernel(*refs, block_t, Bp, threshold, decay_m, decay_s,
                    t_ref_c, use_bias, use_wl, fast_vref):
    it = iter(refs)
    x_ref = next(it)                                  # (block_t*Bp, I)       bf16
    wt_ref = next(it)                                 # (I, block_o)          bf16 (1/tau_s folded)
    b_ref = next(it) if use_bias else None            # (1, block_o)          f32  (1/tau_s folded)
    wl_ref = next(it) if use_wl else None             # (1, block_o)          f32  (1/tau_s folded)
    out_ref = next(it)                                # (block_t*Bp, block_o) bf16
    iresp_ref = next(it)                              # (block_t*Bp, block_o) f32 scratch
    ep_ref, u_ref, o_ref, vref_ref = next(it), next(it), next(it), next(it)

    # Zero-initialize the carried state at the start of the time sequence of
    # this O-block (matches the PyTorch zero-init at t == 0).
    @pl.when(pl.program_id(1) == 0)
    def _():
        ep_ref[...] = jnp.zeros_like(ep_ref)
        u_ref[...] = jnp.zeros_like(u_ref)
        o_ref[...] = jnp.zeros_like(o_ref)
        vref_ref[...] = jnp.zeros_like(vref_ref)

    # One MXU matmul covering all block_t timesteps of this grid step; parked in
    # f32 VMEM scratch so the recurrence only keeps a (Bp, block_o) tile in vregs.
    iresp_ref[...] = jnp.dot(x_ref[...], wt_ref[...],
                             preferred_element_type=jnp.float32)

    block_o = out_ref.shape[-1]
    bias_b = jnp.broadcast_to(b_ref[...], (Bp, block_o)) if use_bias else None
    wl_b = jnp.broadcast_to(wl_ref[...], (Bp, block_o)) if use_wl else None

    zero = jnp.float32(0.0)
    one = jnp.float32(1.0)
    refrac = jnp.float32(max(t_ref_c - 1.0, 0.0))     # vref value right after a spike

    def body(t, carry):
        ep, u, o, vref = carry
        row = pl.multiple_of(t * Bp, Bp)              # aligned (Bp, block_o) tile
        ir = iresp_ref[pl.ds(row, Bp), :]
        if use_bias:
            ir = ir + bias_b
        if use_wl:
            ir = ir + o * wl_b                        # lateral uses previous-step spikes
        ep = ep * decay_s + ir                        # ep' = ep / tau_s (1/tau_s folded)
        u = u * decay_m + ep
        u = jnp.where(vref > zero, zero, u)           # refractory gate
        spike = u > threshold
        o = jnp.where(spike, one, zero)
        if fast_vref:
            # Exactly equals clamp(t_ref*o + (vref-1), 0, t_ref) when threshold > 0
            # (a spike implies vref == 0 because of the refractory gate).
            vref = jnp.where(spike, refrac, jnp.maximum(vref - one, zero))
        else:
            vref = jnp.clip(t_ref_c * o + (vref - one), zero, t_ref_c)
        # Stage spikes into the rows of the slab we just consumed (aligned f32 store).
        iresp_ref[pl.ds(row, Bp), :] = o
        return ep, u, o, vref

    ep, u, o, vref = lax.fori_loop(
        0, block_t, body,
        (ep_ref[...], u_ref[...], o_ref[...], vref_ref[...]),
        unroll=True)

    ep_ref[...] = ep
    u_ref[...] = u
    o_ref[...] = o
    vref_ref[...] = vref

    # Single lane-dense, tile-aligned cast-store of the whole output block (bf16).
    out_ref[...] = iresp_ref[...].astype(out_ref.dtype)


def spiking_forward(x, weight, bias, weight_lateral,
                    threshold, tau_m, tau_s, t_ref,
                    block_t=None, block_o=None):
    """x: [T, B, I], weight: [O, I], bias: [O] or None, weight_lateral: [O] or None.
    Returns output spikes [T, B, O] float32."""
    x = jnp.asarray(x, jnp.float32)
    T, B, I = x.shape
    O = weight.shape[0]
    use_bias = bias is not None
    use_wl = weight_lateral is not None

    threshold = float(threshold)
    tau_m = float(tau_m)
    tau_s = float(tau_s)
    t_ref = float(t_ref)
    inv_tau_s = 1.0 / tau_s

    # ---- layout padding --------------------------------------------------
    Bp = -(-B // 8) * 8                       # f32 sublane tile for state / per-t slices
    Op = -(-O // 128) * 128                   # lane-dense outputs / MXU N dim
    if block_o is None:
        block_o = 256 if (Op % 256 == 0) else 128
    else:
        block_o = max(128, -(-int(block_o) // 128) * 128)
        block_o = min(block_o, Op)
        while Op % block_o != 0:
            block_o -= 128

    # ---- time-block size (amortize grid overhead, fill the MXU M dim) -----
    if block_t is None:
        block_t = max(1, 512 // Bp)
    block_t = max(1, min(int(block_t), T))
    if (Bp % 16) != 0 and (block_t % 2) != 0:
        block_t += 1                          # bf16 x slab needs rows % 16 == 0

    def vmem_bytes(bt):
        rows = bt * Bp
        return (2 * rows * I * 2 +            # x slab (bf16, double-buffered)
                2 * I * block_o * 2 +         # W^T block (bf16, double-buffered)
                2 * rows * block_o * 2 +      # out slab (bf16, double-buffered)
                rows * block_o * 4 +          # i_resp / spike staging scratch (f32)
                4 * Bp * block_o * 4 +        # ep / u / o / v_t_ref state (f32)
                4 * 2 * block_o * 4)          # bias / lateral blocks

    budget = 40 * 1024 * 1024                 # headroom under the 48 MiB scoped limit
    min_bt = 2 if (Bp % 16) != 0 else 1
    while vmem_bytes(block_t) > budget and block_t > min_bt:
        block_t = max(min_bt, block_t // 2)
        if (Bp % 16) != 0 and (block_t % 2) != 0:
            block_t += 1

    Tp = -(-T // block_t) * block_t

    pad_t, pad_b = Tp - T, Bp - B
    if pad_t or pad_b:
        x = jnp.pad(x, ((0, pad_t), (0, pad_b), (0, 0)))
    x2d = x.reshape(Tp * Bp, I).astype(jnp.bfloat16)

    # Fold 1/tau_s into weight / bias / lateral (in f32, before the bf16 cast):
    # drops the ep*inv_tau_s multiply from the per-timestep recurrence.
    w_scaled = jnp.asarray(weight, jnp.float32) * inv_tau_s                  # (O, I)
    w_t = jnp.pad(w_scaled.T, ((0, 0), (0, Op - O))).astype(jnp.bfloat16)    # (I, Op)

    operands = [x2d, w_t]
    in_specs = [
        pl.BlockSpec((block_t * Bp, I), lambda ob, tb: (tb, 0)),   # x slab (per t-block)
        pl.BlockSpec((I, block_o), lambda ob, tb: (0, ob)),        # W^T column block
    ]
    if use_bias:
        b_scaled = jnp.asarray(bias, jnp.float32) * inv_tau_s
        operands.append(jnp.pad(b_scaled, (0, Op - O)).reshape(1, Op))
        in_specs.append(pl.BlockSpec((1, block_o), lambda ob, tb: (0, ob)))
    if use_wl:
        wl_scaled = jnp.asarray(weight_lateral, jnp.float32) * inv_tau_s
        operands.append(jnp.pad(wl_scaled, (0, Op - O)).reshape(1, Op))
        in_specs.append(pl.BlockSpec((1, block_o), lambda ob, tb: (0, ob)))

    kernel = functools.partial(
        _spiking_kernel,
        block_t=block_t, Bp=Bp,
        threshold=threshold,
        decay_m=1.0 - 1.0 / tau_m,
        decay_s=1.0 - 1.0 / tau_s,
        t_ref_c=t_ref,
        use_bias=use_bias, use_wl=use_wl,
        fast_vref=(threshold > 0.0))

    out2d = pl.pallas_call(
        kernel,
        out_shape=jax.ShapeDtypeStruct((Tp * Bp, Op), jnp.bfloat16),
        grid_spec=pltpu.PrefetchScalarGridSpec(
            num_scalar_prefetch=0,
            grid=(Op // block_o, Tp // block_t),       # (parallel O, sequential T)
            in_specs=in_specs,
            out_specs=pl.BlockSpec((block_t * Bp, block_o),
                                   lambda ob, tb: (tb, ob)),
            scratch_shapes=[
                pltpu.VMEM((block_t * Bp, block_o), jnp.float32),  # i_resp / spike staging
                pltpu.VMEM((Bp, block_o), jnp.float32),            # ep (scaled by 1/tau_s)
                pltpu.VMEM((Bp, block_o), jnp.float32),            # u
                pltpu.VMEM((Bp, block_o), jnp.float32),            # o (prev-step spikes)
                pltpu.VMEM((Bp, block_o), jnp.float32),            # v_t_ref
            ],
        ),
        compiler_params=pltpu.CompilerParams(
            dimension_semantics=("parallel", "arbitrary"),
            vmem_limit_bytes=48 * 1024 * 1024),
    )(*operands)

    return out2d.reshape(Tp, Bp, Op)[:T, :B, :O].astype(jnp.float32)


def spiking_reference(x, weight, bias, weight_lateral,
                      threshold, tau_m, tau_s, t_ref):
    """Pure-JAX reference matching the PyTorch forward_ semantics, with the same
    numerics choices as the kernel (1/tau_s folded into weight/bias/lateral in f32,
    bf16 matmul operands, f32 accumulation) so the 0/1 spike outputs match exactly."""
    x = jnp.asarray(x, jnp.float32)
    inv_tau_s = 1.0 / float(tau_s)
    decay_s = 1.0 - 1.0 / float(tau_s)
    decay_m = 1.0 - 1.0 / float(tau_m)
    w_t = (jnp.asarray(weight, jnp.float32) * inv_tau_s).T.astype(jnp.bfloat16)
    b = (jnp.asarray(bias, jnp.float32) * inv_tau_s) if bias is not None else None
    wl = (jnp.asarray(weight_lateral, jnp.float32) * inv_tau_s) \
        if weight_lateral is not None else None
    B = x.shape[1]
    O = weight.shape[0]

    def step(carry, xt):
        ep, u, o, vref = carry
        ir = jnp.dot(xt.astype(jnp.bfloat16), w_t,
                     preferred_element_type=jnp.float32)
        if b is not None:
            ir = ir + b
        if wl is not None:
            ir = ir + o * wl
        ep = ep * decay_s + ir
        u = u * decay_m + ep
        u = u * (1.0 - (vref > 0.0).astype(jnp.float32))
        o = (u > float(threshold)).astype(jnp.float32)
        vref = jnp.clip(float(t_ref) * o + (vref - 1.0), 0.0, float(t_ref))
        return (ep, u, o, vref), o

    z = jnp.zeros((B, O), jnp.float32)
    _, out = lax.scan(step, (z, z, z, z), x)
    return out


if __name__ == "__main__":
    # Small shapes consistent with the module: x is [T, B, I].
    T, B, I, O = 8, 2, 32, 32
    threshold, tau_m, tau_s, t_ref = 1.0, 4.0, 2.0, 2.0
    bias_val, weight_lateral_val = 0.05, 0.1

    key = jax.random.PRNGKey(0)
    kx, kw = jax.random.split(key)
    # Binary spiking input (0/1), as the layer expects spike trains.
    x = (jax.random.uniform(kx, (T, B, I)) > 0.5).astype(jnp.float32)
    # Deterministic weight init matching torch.nn.init.normal_ (std normal).
    weight = jax.random.normal(kw, (O, I), dtype=jnp.float32)
    bias = jnp.ones((O,), jnp.float32) * bias_val
    weight_lateral = jnp.ones((O,), jnp.float32) * weight_lateral_val

    out = spiking_forward(x, weight, bias, weight_lateral,
                          threshold, tau_m, tau_s, t_ref)
    out = jax.block_until_ready(out)

    ref = spiking_reference(x, weight, bias, weight_lateral,
                            threshold, tau_m, tau_s, t_ref)
    assert out.shape == (T, B, O)
    assert jnp.allclose(out, ref, atol=1e-5), "mismatch vs reference"

    print("KERNEL_OK")
</pallas_src>

<mosaic_0001>
module attributes {stable_mosaic.version = 11 : i64} {
  func.func @_spiking_kernel(%arg0: i32, %arg1: i32, %arg2: memref<64x32xbf16, #tpu.memory_space<vmem>>, %arg3: memref<32x128xbf16, #tpu.memory_space<vmem>>, %arg4: memref<1x128xf32, #tpu.memory_space<vmem>>, %arg5: memref<1x128xf32, #tpu.memory_space<vmem>>, %arg6: memref<64x128xbf16, #tpu.memory_space<vmem>>, %arg7: memref<64x128xf32, #tpu.memory_space<vmem>>, %arg8: memref<8x128xf32, #tpu.memory_space<vmem>>, %arg9: memref<8x128xf32, #tpu.memory_space<vmem>>, %arg10: memref<8x128xf32, #tpu.memory_space<vmem>>, %arg11: memref<8x128xf32, #tpu.memory_space<vmem>>) attributes {dimension_semantics = [#tpu.dimension_semantics<parallel>, #tpu.dimension_semantics<arbitrary>], iteration_bounds = array<i64: 1, 1>, scalar_prefetch = 0 : i64, scratch_operands = 5 : i64, tpu.core_type = #tpu.core_type<tc>, window_params = [{transform_indices = @transform_0, window_bounds = array<i64: 64, 32>}, {transform_indices = @transform_1, window_bounds = array<i64: 32, 128>}, {transform_indices = @transform_2, window_bounds = array<i64: 1, 128>}, {transform_indices = @transform_3, window_bounds = array<i64: 1, 128>}, {transform_indices = @transform_4, window_bounds = array<i64: 64, 128>}]} {
    %c0_i32 = arith.constant 0 : i32
    %0 = arith.cmpi eq, %arg1, %c0_i32 : i32
    %1 = arith.extui %0 : i1 to i32
    %c0_i32_0 = arith.constant 0 : i32
    %2 = arith.cmpi ne, %1, %c0_i32_0 : i32
    scf.if %2 {
      %cst_82 = arith.constant 0.000000e+00 : f32
      %264 = vector.broadcast %cst_82 : f32 to vector<8x128xf32>
      %c0_83 = arith.constant 0 : index
      %c0_84 = arith.constant 0 : index
      %265 = vector.load %arg8[%c0_83, %c0_84] : memref<8x128xf32, #tpu.memory_space<vmem>>, vector<8x128xf32>
      tpu.vector_store %arg8[%c0_83, %c0_84], %264 {strides = array<i32>} : memref<8x128xf32, #tpu.memory_space<vmem>>, vector<8x128xf32>,
      %cst_85 = arith.constant 0.000000e+00 : f32
      %266 = vector.broadcast %cst_85 : f32 to vector<8x128xf32>
      %c0_86 = arith.constant 0 : index
      %c0_87 = arith.constant 0 : index
      %267 = vector.load %arg9[%c0_86, %c0_87] : memref<8x128xf32, #tpu.memory_space<vmem>>, vector<8x128xf32>
      tpu.vector_store %arg9[%c0_86, %c0_87], %266 {strides = array<i32>} : memref<8x128xf32, #tpu.memory_space<vmem>>, vector<8x128xf32>,
      %cst_88 = arith.constant 0.000000e+00 : f32
      %268 = vector.broadcast %cst_88 : f32 to vector<8x128xf32>
      %c0_89 = arith.constant 0 : index
      %c0_90 = arith.constant 0 : index
      %269 = vector.load %arg10[%c0_89, %c0_90] : memref<8x128xf32, #tpu.memory_space<vmem>>, vector<8x128xf32>
      tpu.vector_store %arg10[%c0_89, %c0_90], %268 {strides = array<i32>} : memref<8x128xf32, #tpu.memory_space<vmem>>, vector<8x128xf32>,
      %cst_91 = arith.constant 0.000000e+00 : f32
      %270 = vector.broadcast %cst_91 : f32 to vector<8x128xf32>
      %c0_92 = arith.constant 0 : index
      %c0_93 = arith.constant 0 : index
      %271 = vector.load %arg11[%c0_92, %c0_93] : memref<8x128xf32, #tpu.memory_space<vmem>>, vector<8x128xf32>
      tpu.vector_store %arg11[%c0_92, %c0_93], %270 {strides = array<i32>} : memref<8x128xf32, #tpu.memory_space<vmem>>, vector<8x128xf32>,
    } else {
    }
    %c0 = arith.constant 0 : index
    %c0_1 = arith.constant 0 : index
    %3 = vector.load %arg2[%c0, %c0_1] : memref<64x32xbf16, #tpu.memory_space<vmem>>, vector<64x32xbf16>
    %c0_2 = arith.constant 0 : index
    %c0_3 = arith.constant 0 : index
    %4 = vector.load %arg3[%c0_2, %c0_3] : memref<32x128xbf16, #tpu.memory_space<vmem>>, vector<32x128xbf16>
    %cst = arith.constant dense<0.000000e+00> : vector<64x128xf32>
    %5 = tpu.matmul %3, %4, %cst {dimension_numbers = #tpu.dot_dimension_numbers<[1], [0], [0], [1], [0, 0, 1, 1], [], []>} : vector<64x32xbf16>, vector<32x128xbf16>, vector<64x128xf32> -> vector<64x128xf32>
    %c0_4 = arith.constant 0 : index
    %c0_5 = arith.constant 0 : index
    %6 = vector.load %arg7[%c0_4, %c0_5] : memref<64x128xf32, #tpu.memory_space<vmem>>, vector<64x128xf32>
    tpu.vector_store %arg7[%c0_4, %c0_5], %5 {strides = array<i32>} : memref<64x128xf32, #tpu.memory_space<vmem>>, vector<64x128xf32>,
    %c0_6 = arith.constant 0 : index
    %c0_7 = arith.constant 0 : index
    %7 = vector.load %arg4[%c0_6, %c0_7] : memref<1x128xf32, #tpu.memory_space<vmem>>, vector<1x128xf32>
    %8 = vector.shape_cast %7 : vector<1x128xf32> to vector<1x128xf32>
    %9 = vector.broadcast %8 : vector<1x128xf32> to vector<8x128xf32>
    %c0_8 = arith.constant 0 : index
    %c0_9 = arith.constant 0 : index
    %10 = vector.load %arg5[%c0_8, %c0_9] : memref<1x128xf32, #tpu.memory_space<vmem>>, vector<1x128xf32>
    %11 = vector.shape_cast %10 : vector<1x128xf32> to vector<1x128xf32>
    %12 = vector.broadcast %11 : vector<1x128xf32> to vector<8x128xf32>
    %c0_10 = arith.constant 0 : index
    %c0_11 = arith.constant 0 : index
    %13 = vector.load %arg8[%c0_10, %c0_11] : memref<8x128xf32, #tpu.memory_space<vmem>>, vector<8x128xf32>
    %c0_12 = arith.constant 0 : index
    %c0_13 = arith.constant 0 : index
    %14 = vector.load %arg9[%c0_12, %c0_13] : memref<8x128xf32, #tpu.memory_space<vmem>>, vector<8x128xf32>
    %c0_14 = arith.constant 0 : index
    %c0_15 = arith.constant 0 : index
    %15 = vector.load %arg10[%c0_14, %c0_15] : memref<8x128xf32, #tpu.memory_space<vmem>>, vector<8x128xf32>
    %c0_16 = arith.constant 0 : index
    %c0_17 = arith.constant 0 : index
    %16 = vector.load %arg11[%c0_16, %c0_17] : memref<8x128xf32, #tpu.memory_space<vmem>>, vector<8x128xf32>
    %cst_18 = arith.constant 0.000000e+00 : f32
    %cst_19 = arith.constant 1.000000e+00 : f32
    %cst_20 = arith.constant 1.000000e+00 : f32
    %c0_i32_21 = arith.constant 0 : i32
    %c8_i32 = arith.constant 8 : i32
    %17 = arith.muli %c0_i32_21, %c8_i32 : i32
    %18 = tpu.assume_multiple %17, 8 : i32
    %19 = arith.index_cast %18 : i32 to index
    %c0_22 = arith.constant 0 : index
    %20 = vector.load %arg7[%19, %c0_22] : memref<64x128xf32, #tpu.memory_space<vmem>>, vector<8x128xf32>
    %21 = arith.addf %20, %9 : vector<8x128xf32>
    %22 = arith.mulf %15, %12 : vector<8x128xf32>
    %23 = arith.addf %21, %22 : vector<8x128xf32>
    %cst_23 = arith.constant 5.000000e-01 : f32
    %24 = vector.broadcast %cst_23 : f32 to vector<8x128xf32>
    %25 = arith.mulf %13, %24 : vector<8x128xf32>
    %26 = arith.addf %25, %23 : vector<8x128xf32>
    %cst_24 = arith.constant 7.500000e-01 : f32
    %27 = vector.broadcast %cst_24 : f32 to vector<8x128xf32>
    %28 = arith.mulf %14, %27 : vector<8x128xf32>
    %29 = arith.addf %28, %26 : vector<8x128xf32>
    %30 = vector.broadcast %cst_18 : f32 to vector<8x128xf32>
    %31 = arith.cmpf ogt, %16, %30 : vector<8x128xf32>
    %32 = vector.broadcast %cst_18 : f32 to vector<8x128xf32>
    %33 = arith.select %31, %32, %29 : vector<8x128xi1>, vector<8x128xf32>
    %cst_25 = arith.constant 1.000000e+00 : f32
    %34 = vector.broadcast %cst_25 : f32 to vector<8x128xf32>
    %35 = arith.cmpf ogt, %33, %34 : vector<8x128xf32>
    %36 = vector.broadcast %cst_19 : f32 to vector<8x128xf32>
    %37 = vector.broadcast %cst_18 : f32 to vector<8x128xf32>
    %38 = arith.select %35, %36, %37 : vector<8x128xi1>, vector<8x128xf32>
    %39 = vector.broadcast %cst_19 : f32 to vector<8x128xf32>
    %40 = arith.subf %16, %39 : vector<8x128xf32>
    %41 = vector.broadcast %cst_18 : f32 to vector<8x128xf32>
    %42 = arith.maximumf %40, %41 : vector<8x128xf32>
    %43 = vector.broadcast %cst_20 : f32 to vector<8x128xf32>
    %44 = arith.select %35, %43, %42 : vector<8x128xi1>, vector<8x128xf32>
    %45 = arith.index_cast %18 : i32 to index
    %c0_26 = arith.constant 0 : index
    %46 = vector.load %arg7[%45, %c0_26] : memref<64x128xf32, #tpu.memory_space<vmem>>, vector<8x128xf32>
    tpu.vector_store %arg7[%45, %c0_26], %38 {strides = array<i32>} : memref<64x128xf32, #tpu.memory_space<vmem>>, vector<8x128xf32>,
    %c1_i32 = arith.constant 1 : i32
    %c8_i32_27 = arith.constant 8 : i32
    %47 = arith.muli %c1_i32, %c8_i32_27 : i32
    %48 = tpu.assume_multiple %47, 8 : i32
    %49 = arith.index_cast %48 : i32 to index
    %c0_28 = arith.constant 0 : index
    %50 = vector.load %arg7[%49, %c0_28] : memref<64x128xf32, #tpu.memory_space<vmem>>, vector<8x128xf32>
    %51 = arith.addf %50, %9 : vector<8x128xf32>
    %52 = arith.mulf %38, %12 : vector<8x128xf32>
    %53 = arith.addf %51, %52 : vector<8x128xf32>
    %cst_29 = arith.constant 5.000000e-01 : f32
    %54 = vector.broadcast %cst_29 : f32 to vector<8x128xf32>
    %55 = arith.mulf %26, %54 : vector<8x128xf32>
    %56 = arith.addf %55, %53 : vector<8x128xf32>
    %cst_30 = arith.constant 7.500000e-01 : f32
    %57 = vector.broadcast %cst_30 : f32 to vector<8x128xf32>
    %58 = arith.mulf %33, %57 : vector<8x128xf32>
    %59 = arith.addf %58, %56 : vector<8x128xf32>
    %60 = vector.broadcast %cst_18 : f32 to vector<8x128xf32>
    %61 = arith.cmpf ogt, %44, %60 : vector<8x128xf32>
    %62 = vector.broadcast %cst_18 : f32 to vector<8x128xf32>
    %63 = arith.select %61, %62, %59 : vector<8x128xi1>, vector<8x128xf32>
    %cst_31 = arith.constant 1.000000e+00 : f32
    %64 = vector.broadcast %cst_31 : f32 to vector<8x128xf32>
    %65 = arith.cmpf ogt, %63, %64 : vector<8x128xf32>
    %66 = vector.broadcast %cst_19 : f32 to vector<8x128xf32>
    %67 = vector.broadcast %cst_18 : f32 to vector<8x128xf32>
    %68 = arith.select %65, %66, %67 : vector<8x128xi1>, vector<8x128xf32>
    %69 = vector.broadcast %cst_19 : f32 to vector<8x128xf32>
    %70 = arith.subf %44, %69 : vector<8x128xf32>
    %71 = vector.broadcast %cst_18 : f32 to vector<8x128xf32>
    %72 = arith.maximumf %70, %71 : vector<8x128xf32>
    %73 = vector.broadcast %cst_20 : f32 to vector<8x128xf32>
    %74 = arith.select %65, %73, %72 : vector<8x128xi1>, vector<8x128xf32>
    %75 = arith.index_cast %48 : i32 to index
    %c0_32 = arith.constant 0 : index
    %76 = vector.load %arg7[%75, %c0_32] : memref<64x128xf32, #tpu.memory_space<vmem>>, vector<8x128xf32>
    tpu.vector_store %arg7[%75, %c0_32], %68 {strides = array<i32>} : memref<64x128xf32, #tpu.memory_space<vmem>>, vector<8x128xf32>,
    %c2_i32 = arith.constant 2 : i32
    %c8_i32_33 = arith.constant 8 : i32
    %77 = arith.muli %c2_i32, %c8_i32_33 : i32
    %78 = tpu.assume_multiple %77, 8 : i32
    %79 = arith.index_cast %78 : i32 to index
    %c0_34 = arith.constant 0 : index
    %80 = vector.load %arg7[%79, %c0_34] : memref<64x128xf32, #tpu.memory_space<vmem>>, vector<8x128xf32>
    %81 = arith.addf %80, %9 : vector<8x128xf32>
    %82 = arith.mulf %68, %12 : vector<8x128xf32>
    %83 = arith.addf %81, %82 : vector<8x128xf32>
    %cst_35 = arith.constant 5.000000e-01 : f32
    %84 = vector.broadcast %cst_35 : f32 to vector<8x128xf32>
    %85 = arith.mulf %56, %84 : vector<8x128xf32>
    %86 = arith.addf %85, %83 : vector<8x128xf32>
    %cst_36 = arith.constant 7.500000e-01 : f32
    %87 = vector.broadcast %cst_36 : f32 to vector<8x128xf32>
    %88 = arith.mulf %63, %87 : vector<8x128xf32>
    %89 = arith.addf %88, %86 : vector<8x128xf32>
    %90 = vector.broadcast %cst_18 : f32 to vector<8x128xf32>
    %91 = arith.cmpf ogt, %74, %90 : vector<8x128xf32>
    %92 = vector.broadcast %cst_18 : f32 to vector<8x128xf32>
    %93 = arith.select %91, %92, %89 : vector<8x128xi1>, vector<8x128xf32>
    %cst_37 = arith.constant 1.000000e+00 : f32
    %94 = vector.broadcast %cst_37 : f32 to vector<8x128xf32>
    %95 = arith.cmpf ogt, %93, %94 : vector<8x128xf32>
    %96 = vector.broadcast %cst_19 : f32 to vector<8x128xf32>
    %97 = vector.broadcast %cst_18 : f32 to vector<8x128xf32>
    %98 = arith.select %95, %96, %97 : vector<8x128xi1>, vector<8x128xf32>
    %99 = vector.broadcast %cst_19 : f32 to vector<8x128xf32>
    %100 = arith.subf %74, %99 : vector<8x128xf32>
    %101 = vector.broadcast %cst_18 : f32 to vector<8x128xf32>
    %102 = arith.maximumf %100, %101 : vector<8x128xf32>
    %103 = vector.broadcast %cst_20 : f32 to vector<8x128xf32>
    %104 = arith.select %95, %103, %102 : vector<8x128xi1>, vector<8x128xf32>
    %105 = arith.index_cast %78 : i32 to index
    %c0_38 = arith.constant 0 : index
    %106 = vector.load %arg7[%105, %c0_38] : memref<64x128xf32, #tpu.memory_space<vmem>>, vector<8x128xf32>
    tpu.vector_store %arg7[%105, %c0_38], %98 {strides = array<i32>} : memref<64x128xf32, #tpu.memory_space<vmem>>, vector<8x128xf32>,
    %c3_i32 = arith.constant 3 : i32
    %c8_i32_39 = arith.constant 8 : i32
    %107 = arith.muli %c3_i32, %c8_i32_39 : i32
    %108 = tpu.assume_multiple %107, 8 : i32
    %109 = arith.index_cast %108 : i32 to index
    %c0_40 = arith.constant 0 : index
    %110 = vector.load %arg7[%109, %c0_40] : memref<64x128xf32, #tpu.memory_space<vmem>>, vector<8x128xf32>
    %111 = arith.addf %110, %9 : vector<8x128xf32>
    %112 = arith.mulf %98, %12 : vector<8x128xf32>
    %113 = arith.addf %111, %112 : vector<8x128xf32>
    %cst_41 = arith.constant 5.000000e-01 : f32
    %114 = vector.broadcast %cst_41 : f32 to vector<8x128xf32>
    %115 = arith.mulf %86, %114 : vector<8x128xf32>
    %116 = arith.addf %115, %113 : vector<8x128xf32>
    %cst_42 = arith.constant 7.500000e-01 : f32
    %117 = vector.broadcast %cst_42 : f32 to vector<8x128xf32>
    %118 = arith.mulf %93, %117 : vector<8x128xf32>
    %119 = arith.addf %118, %116 : vector<8x128xf32>
    %120 = vector.broadcast %cst_18 : f32 to vector<8x128xf32>
    %121 = arith.cmpf ogt, %104, %120 : vector<8x128xf32>
    %122 = vector.broadcast %cst_18 : f32 to vector<8x128xf32>
    %123 = arith.select %121, %122, %119 : vector<8x128xi1>, vector<8x128xf32>
    %cst_43 = arith.constant 1.000000e+00 : f32
    %124 = vector.broadcast %cst_43 : f32 to vector<8x128xf32>
    %125 = arith.cmpf ogt, %123, %124 : vector<8x128xf32>
    %126 = vector.broadcast %cst_19 : f32 to vector<8x128xf32>
    %127 = vector.broadcast %cst_18 : f32 to vector<8x128xf32>
    %128 = arith.select %125, %126, %127 : vector<8x128xi1>, vector<8x128xf32>
    %129 = vector.broadcast %cst_19 : f32 to vector<8x128xf32>
    %130 = arith.subf %104, %129 : vector<8x128xf32>
    %131 = vector.broadcast %cst_18 : f32 to vector<8x128xf32>
    %132 = arith.maximumf %130, %131 : vector<8x128xf32>
    %133 = vector.broadcast %cst_20 : f32 to vector<8x128xf32>
    %134 = arith.select %125, %133, %132 : vector<8x128xi1>, vector<8x128xf32>
    %135 = arith.index_cast %108 : i32 to index
    %c0_44 = arith.constant 0 : index
    %136 = vector.load %arg7[%135, %c0_44] : memref<64x128xf32, #tpu.memory_space<vmem>>, vector<8x128xf32>
    tpu.vector_store %arg7[%135, %c0_44], %128 {strides = array<i32>} : memref<64x128xf32, #tpu.memory_space<vmem>>, vector<8x128xf32>,
    %c4_i32 = arith.constant 4 : i32
    %c8_i32_45 = arith.constant 8 : i32
    %137 = arith.muli %c4_i32, %c8_i32_45 : i32
    %138 = tpu.assume_multiple %137, 8 : i32
    %139 = arith.index_cast %138 : i32 to index
    %c0_46 = arith.constant 0 : index
    %140 = vector.load %arg7[%139, %c0_46] : memref<64x128xf32, #tpu.memory_space<vmem>>, vector<8x128xf32>
    %141 = arith.addf %140, %9 : vector<8x128xf32>
    %142 = arith.mulf %128, %12 : vector<8x128xf32>
    %143 = arith.addf %141, %142 : vector<8x128xf32>
    %cst_47 = arith.constant 5.000000e-01 : f32
    %144 = vector.broadcast %cst_47 : f32 to vector<8x128xf32>
    %145 = arith.mulf %116, %144 : vector<8x128xf32>
    %146 = arith.addf %145, %143 : vector<8x128xf32>
    %cst_48 = arith.constant 7.500000e-01 : f32
    %147 = vector.broadcast %cst_48 : f32 to vector<8x128xf32>
    %148 = arith.mulf %123, %147 : vector<8x128xf32>
    %149 = arith.addf %148, %146 : vector<8x128xf32>
    %150 = vector.broadcast %cst_18 : f32 to vector<8x128xf32>
    %151 = arith.cmpf ogt, %134, %150 : vector<8x128xf32>
    %152 = vector.broadcast %cst_18 : f32 to vector<8x128xf32>
    %153 = arith.select %151, %152, %149 : vector<8x128xi1>, vector<8x128xf32>
    %cst_49 = arith.constant 1.000000e+00 : f32
    %154 = vector.broadcast %cst_49 : f32 to vector<8x128xf32>
    %155 = arith.cmpf ogt, %153, %154 : vector<8x128xf32>
    %156 = vector.broadcast %cst_19 : f32 to vector<8x128xf32>
    %157 = vector.broadcast %cst_18 : f32 to vector<8x128xf32>
    %158 = arith.select %155, %156, %157 : vector<8x128xi1>, vector<8x128xf32>
    %159 = vector.broadcast %cst_19 : f32 to vector<8x128xf32>
    %160 = arith.subf %134, %159 : vector<8x128xf32>
    %161 = vector.broadcast %cst_18 : f32 to vector<8x128xf32>
    %162 = arith.maximumf %160, %161 : vector<8x128xf32>
    %163 = vector.broadcast %cst_20 : f32 to vector<8x128xf32>
    %164 = arith.select %155, %163, %162 : vector<8x128xi1>, vector<8x128xf32>
    %165 = arith.index_cast %138 : i32 to index
    %c0_50 = arith.constant 0 : index
    %166 = vector.load %arg7[%165, %c0_50] : memref<64x128xf32, #tpu.memory_space<vmem>>, vector<8x128xf32>
    tpu.vector_store %arg7[%165, %c0_50], %158 {strides = array<i32>} : memref<64x128xf32, #tpu.memory_space<vmem>>, vector<8x128xf32>,
    %c5_i32 = arith.constant 5 : i32
    %c8_i32_51 = arith.constant 8 : i32
    %167 = arith.muli %c5_i32, %c8_i32_51 : i32
    %168 = tpu.assume_multiple %167, 8 : i32
    %169 = arith.index_cast %168 : i32 to index
    %c0_52 = arith.constant 0 : index
    %170 = vector.load %arg7[%169, %c0_52] : memref<64x128xf32, #tpu.memory_space<vmem>>, vector<8x128xf32>
    %171 = arith.addf %170, %9 : vector<8x128xf32>
    %172 = arith.mulf %158, %12 : vector<8x128xf32>
    %173 = arith.addf %171, %172 : vector<8x128xf32>
    %cst_53 = arith.constant 5.000000e-01 : f32
    %174 = vector.broadcast %cst_53 : f32 to vector<8x128xf32>
    %175 = arith.mulf %146, %174 : vector<8x128xf32>
    %176 = arith.addf %175, %173 : vector<8x128xf32>
    %cst_54 = arith.constant 7.500000e-01 : f32
    %177 = vector.broadcast %cst_54 : f32 to vector<8x128xf32>
    %178 = arith.mulf %153, %177 : vector<8x128xf32>
    %179 = arith.addf %178, %176 : vector<8x128xf32>
    %180 = vector.broadcast %cst_18 : f32 to vector<8x128xf32>
    %181 = arith.cmpf ogt, %164, %180 : vector<8x128xf32>
    %182 = vector.broadcast %cst_18 : f32 to vector<8x128xf32>
    %183 = arith.select %181, %182, %179 : vector<8x128xi1>, vector<8x128xf32>
    %cst_55 = arith.constant 1.000000e+00 : f32
    %184 = vector.broadcast %cst_55 : f32 to vector<8x128xf32>
    %185 = arith.cmpf ogt, %183, %184 : vector<8x128xf32>
    %186 = vector.broadcast %cst_19 : f32 to vector<8x128xf32>
    %187 = vector.broadcast %cst_18 : f32 to vector<8x128xf32>
    %188 = arith.select %185, %186, %187 : vector<8x128xi1>, vector<8x128xf32>
    %189 = vector.broadcast %cst_19 : f32 to vector<8x128xf32>
    %190 = arith.subf %164, %189 : vector<8x128xf32>
    %191 = vector.broadcast %cst_18 : f32 to vector<8x128xf32>
    %192 = arith.maximumf %190, %191 : vector<8x128xf32>
    %193 = vector.broadcast %cst_20 : f32 to vector<8x128xf32>
    %194 = arith.select %185, %193, %192 : vector<8x128xi1>, vector<8x128xf32>
    %195 = arith.index_cast %168 : i32 to index
    %c0_56 = arith.constant 0 : index
    %196 = vector.load %arg7[%195, %c0_56] : memref<64x128xf32, #tpu.memory_space<vmem>>, vector<8x128xf32>
    tpu.vector_store %arg7[%195, %c0_56], %188 {strides = array<i32>} : memref<64x128xf32, #tpu.memory_space<vmem>>, vector<8x128xf32>,
    %c6_i32 = arith.constant 6 : i32
    %c8_i32_57 = arith.constant 8 : i32
    %197 = arith.muli %c6_i32, %c8_i32_57 : i32
    %198 = tpu.assume_multiple %197, 8 : i32
    %199 = arith.index_cast %198 : i32 to index
    %c0_58 = arith.constant 0 : index
    %200 = vector.load %arg7[%199, %c0_58] : memref<64x128xf32, #tpu.memory_space<vmem>>, vector<8x128xf32>
    %201 = arith.addf %200, %9 : vector<8x128xf32>
    %202 = arith.mulf %188, %12 : vector<8x128xf32>
    %203 = arith.addf %201, %202 : vector<8x128xf32>
    %cst_59 = arith.constant 5.000000e-01 : f32
    %204 = vector.broadcast %cst_59 : f32 to vector<8x128xf32>
    %205 = arith.mulf %176, %204 : vector<8x128xf32>
    %206 = arith.addf %205, %203 : vector<8x128xf32>
    %cst_60 = arith.constant 7.500000e-01 : f32
    %207 = vector.broadcast %cst_60 : f32 to vector<8x128xf32>
    %208 = arith.mulf %183, %207 : vector<8x128xf32>
    %209 = arith.addf %208, %206 : vector<8x128xf32>
    %210 = vector.broadcast %cst_18 : f32 to vector<8x128xf32>
    %211 = arith.cmpf ogt, %194, %210 : vector<8x128xf32>
    %212 = vector.broadcast %cst_18 : f32 to vector<8x128xf32>
    %213 = arith.select %211, %212, %209 : vector<8x128xi1>, vector<8x128xf32>
    %cst_61 = arith.constant 1.000000e+00 : f32
    %214 = vector.broadcast %cst_61 : f32 to vector<8x128xf32>
    %215 = arith.cmpf ogt, %213, %214 : vector<8x128xf32>
    %216 = vector.broadcast %cst_19 : f32 to vector<8x128xf32>
    %217 = vector.broadcast %cst_18 : f32 to vector<8x128xf32>
    %218 = arith.select %215, %216, %217 : vector<8x128xi1>, vector<8x128xf32>
    %219 = vector.broadcast %cst_19 : f32 to vector<8x128xf32>
    %220 = arith.subf %194, %219 : vector<8x128xf32>
    %221 = vector.broadcast %cst_18 : f32 to vector<8x128xf32>
    %222 = arith.maximumf %220, %221 : vector<8x128xf32>
    %223 = vector.broadcast %cst_20 : f32 to vector<8x128xf32>
    %224 = arith.select %215, %223, %222 : vector<8x128xi1>, vector<8x128xf32>
    %225 = arith.index_cast %198 : i32 to index
    %c0_62 = arith.constant 0 : index
    %226 = vector.load %arg7[%225, %c0_62] : memref<64x128xf32, #tpu.memory_space<vmem>>, vector<8x128xf32>
    tpu.vector_store %arg7[%225, %c0_62], %218 {strides = array<i32>} : memref<64x128xf32, #tpu.memory_space<vmem>>, vector<8x128xf32>,
    %c7_i32 = arith.constant 7 : i32
    %c8_i32_63 = arith.constant 8 : i32
    %227 = arith.muli %c7_i32, %c8_i32_63 : i32
    %228 = tpu.assume_multiple %227, 8 : i32
    %229 = arith.index_cast %228 : i32 to index
    %c0_64 = arith.constant 0 : index
    %230 = vector.load %arg7[%229, %c0_64] : memref<64x128xf32, #tpu.memory_space<vmem>>, vector<8x128xf32>
    %231 = arith.addf %230, %9 : vector<8x128xf32>
    %232 = arith.mulf %218, %12 : vector<8x128xf32>
    %233 = arith.addf %231, %232 : vector<8x128xf32>
    %cst_65 = arith.constant 5.000000e-01 : f32
    %234 = vector.broadcast %cst_65 : f32 to vector<8x128xf32>
    %235 = arith.mulf %206, %234 : vector<8x128xf32>
    %236 = arith.addf %235, %233 : vector<8x128xf32>
    %cst_66 = arith.constant 7.500000e-01 : f32
    %237 = vector.broadcast %cst_66 : f32 to vector<8x128xf32>
    %238 = arith.mulf %213, %237 : vector<8x128xf32>
    %239 = arith.addf %238, %236 : vector<8x128xf32>
    %240 = vector.broadcast %cst_18 : f32 to vector<8x128xf32>
    %241 = arith.cmpf ogt, %224, %240 : vector<8x128xf32>
    %242 = vector.broadcast %cst_18 : f32 to vector<8x128xf32>
    %243 = arith.select %241, %242, %239 : vector<8x128xi1>, vector<8x128xf32>
    %cst_67 = arith.constant 1.000000e+00 : f32
    %244 = vector.broadcast %cst_67 : f32 to vector<8x128xf32>
    %245 = arith.cmpf ogt, %243, %244 : vector<8x128xf32>
    %246 = vector.broadcast %cst_19 : f32 to vector<8x128xf32>
    %247 = vector.broadcast %cst_18 : f32 to vector<8x128xf32>
    %248 = arith.select %245, %246, %247 : vector<8x128xi1>, vector<8x128xf32>
    %249 = vector.broadcast %cst_19 : f32 to vector<8x128xf32>
    %250 = arith.subf %224, %249 : vector<8x128xf32>
    %251 = vector.broadcast %cst_18 : f32 to vector<8x128xf32>
    %252 = arith.maximumf %250, %251 : vector<8x128xf32>
    %253 = vector.broadcast %cst_20 : f32 to vector<8x128xf32>
    %254 = arith.select %245, %253, %252 : vector<8x128xi1>, vector<8x128xf32>
    %255 = arith.index_cast %228 : i32 to index
    %c0_68 = arith.constant 0 : index
    %256 = vector.load %arg7[%255, %c0_68] : memref<64x128xf32, #tpu.memory_space<vmem>>, vector<8x128xf32>
    tpu.vector_store %arg7[%255, %c0_68], %248 {strides = array<i32>} : memref<64x128xf32, #tpu.memory_space<vmem>>, vector<8x128xf32>,
    %c8_i32_69 = arith.constant 8 : i32
    %c0_70 = arith.constant 0 : index
    %c0_71 = arith.constant 0 : index
    %257 = vector.load %arg8[%c0_70, %c0_71] : memref<8x128xf32, #tpu.memory_space<vmem>>, vector<8x128xf32>
    tpu.vector_store %arg8[%c0_70, %c0_71], %236 {strides = array<i32>} : memref<8x128xf32, #tpu.memory_space<vmem>>, vector<8x128xf32>,
    %c0_72 = arith.constant 0 : index
    %c0_73 = arith.constant 0 : index
    %258 = vector.load %arg9[%c0_72, %c0_73] : memref<8x128xf32, #tpu.memory_space<vmem>>, vector<8x128xf32>
    tpu.vector_store %arg9[%c0_72, %c0_73], %243 {strides = array<i32>} : memref<8x128xf32, #tpu.memory_space<vmem>>, vector<8x128xf32>,
    %c0_74 = arith.constant 0 : index
    %c0_75 = arith.constant 0 : index
    %259 = vector.load %arg10[%c0_74, %c0_75] : memref<8x128xf32, #tpu.memory_space<vmem>>, vector<8x128xf32>
    tpu.vector_store %arg10[%c0_74, %c0_75], %248 {strides = array<i32>} : memref<8x128xf32, #tpu.memory_space<vmem>>, vector<8x128xf32>,
    %c0_76 = arith.constant 0 : index
    %c0_77 = arith.constant 0 : index
    %260 = vector.load %arg11[%c0_76, %c0_77] : memref<8x128xf32, #tpu.memory_space<vmem>>, vector<8x128xf32>
    tpu.vector_store %arg11[%c0_76, %c0_77], %254 {strides = array<i32>} : memref<8x128xf32, #tpu.memory_space<vmem>>, vector<8x128xf32>,
    %c0_78 = arith.constant 0 : index
    %c0_79 = arith.constant 0 : index
    %261 = vector.load %arg7[%c0_78, %c0_79] : memref<64x128xf32, #tpu.memory_space<vmem>>, vector<64x128xf32>
    %262 = arith.truncf %261 : vector<64x128xf32> to vector<64x128xbf16>
    %c0_80 = arith.constant 0 : index
    %c0_81 = arith.constant 0 : index
    %263 = vector.load %arg6[%c0_80, %c0_81] : memref<64x128xbf16, #tpu.memory_space<vmem>>, vector<64x128xbf16>
    tpu.vector_store %arg6[%c0_80, %c0_81], %262 {strides = array<i32>} : memref<64x128xbf16, #tpu.memory_space<vmem>>, vector<64x128xbf16>,
    return
  }
  func.func @transform_0(%arg0: i32, %arg1: i32) -> (i32, i32) {
    %c0_i32 = arith.constant 0 : i32
    %c0_i32_0 = arith.constant 0 : i32
    return %arg1, %c0_i32 : i32, i32
  }
  func.func @transform_1(%arg0: i32, %arg1: i32) -> (i32, i32) {
    %c0_i32 = arith.constant 0 : i32
    %c0_i32_0 = arith.constant 0 : i32
    return %c0_i32, %arg0 : i32, i32
  }
  func.func @transform_2(%arg0: i32, %arg1: i32) -> (i32, i32) {
    %c0_i32 = arith.constant 0 : i32
    %c0_i32_0 = arith.constant 0 : i32
    return %c0_i32, %arg0 : i32, i32
  }
  func.func @transform_3(%arg0: i32, %arg1: i32) -> (i32, i32) {
    %c0_i32 = arith.constant 0 : i32
    %c0_i32_0 = arith.constant 0 : i32
    return %c0_i32, %arg0 : i32, i32
  }
  func.func @transform_4(%arg0: i32, %arg1: i32) -> (i32, i32) {
    %c0_i32 = arith.constant 0 : i32
    return %arg1, %arg0 : i32, i32
  }
}

</mosaic_0001>

<bundles_post_ra>
// kernel: tpu_custom_call.1
= control target key start
LH: loop header
LB: loop body
LE: loop exit
PB: predicated region body
PF: predicated region fallthrough
CT: control target
= control target key end

     0   :  { %vm71_vm0 = vcmask 261120   ;;  %s579_s0 = inlined_call_operand.vmem [shape: bf16[64,32], index: 0, kind: input, shape index: {}]   ;;  %s580_s1 = inlined_call_operand.vmem [shape: bf16[32,128], index: 1, kind: input, shape index: {}]   ;;  %s581_s2 = inlined_call_operand.vmem [shape: f32[1,128], index: 2, kind: input, shape index: {}]   ;;  %s582_s3 = inlined_call_operand.vmem [shape: f32[1,128], index: 3, kind: input, shape index: {}]   ;;  %s583_s4 = inlined_call_operand.hbm [shape: bf16[64,128], index: 4, kind: output, shape index: {}]  }
   0x1   :  { %v463_v0 = vld [vmem:[%s580_s1 + $0x8] sm:$0xff]   ;;  %v464_v1 = vld [vmem:[%s580_s1] sm:$0xff]   ;;  %v467_v3 = vld [vmem:[%s579_s0 + $0x10] sm:$0xff]  }
   0x2   :  { %443 = vmatprep.subr.bf16.mxu0 %v463_v0  ;;  %v465_v2 = vld [vmem:[%s579_s0] sm:$0xff]   ;;  %455 = vmatprep.subr.bf16.mxu1 %v463_v0  ;;  %v466_v4 = vld [vmem:[%s579_s0 + $0x8] sm:$0xff]   ;;  %v468_v5 = vld [vmem:[%s579_s0 + $0x18] sm:$0xff]  }
   0x3   :  { %444 = vmatpush3.bf16.msra.mxu0 %v463_v0  ;;  %457 = vmatpush3.bf16.msra.mxu1 %v463_v0 }
   0x4   :  { %445 = vmatprep.subr.bf16.mxu0 %v464_v1  ;;  %447 = vmatprep.mubr.msk.bf16.mxu0 %vm71_vm0, %v465_v2 }
   0x5   :  { %456 = vmatprep.subr.bf16.mxu1 %v464_v1  ;;  %451 = vmatprep.mubr.msk.bf16.mxu1 %vm71_vm0, %v467_v3 }
   0x6   :  { %9 = vsyncpa [#allocation8], 0  ;;  %v545_v6 = vld [vmem:[%s582_s3] ss:$0 sm:$0xff]  ;;  %v491_v15 = vmov 0.0   ;;  %s492_s0 = smov [#allocation7]  }
   0x7   :  { %446 = vmatpush3.bf16.msra.mxu0 %v464_v1  ;;  %458 = vmatpush3.bf16.msra.mxu1 %v464_v1  ;;  %v177_v8 = vmul.f32 0.0, %v545_v6  ;;  %v551_v9 = vld [vmem:[%s581_s2] ss:$0 sm:$0xff]  ;;  %s367_s2 = sshll.u32 %s492_s0, 4  ;;  %s368_s2 = int_to_ptr.vmem [resolvable:$true] %s367_s2 }
   0x8   :  { %s469_s3 = scalar_lea.vmem %s368_s2, 512  ;;  %p474_p1 = scmp.lt.s32.totalorder %s368_s2, %s368_s2 }
   0x9   :  { %p470_p0 = scmp.ne.s32.totalorder %s368_s2, %s469_s3  ;;  %p475_p2 = scmp.lt.s32.totalorder %s469_s3, %s469_s3 }
   0xa   :  { %448 = vmatmul.mubr.msk.bf16.vlgmr.msra.gmra.mxu0 %vm71_vm0, %v466_v4  ;;  %452 = vmatmul.mubr.msk.bf16.vlgmr.msra.gmra.mxu1 %vm71_vm0, %v468_v5 }
   0xb   :  { %p476_p3 = por %p475_p2, %p474_p1 }
   0xd   :  { %p477_p4 = pnand %p476_p3, %p470_p0 }
  0xca   :  { %v449_v7 = vpop.f32.mrf.mxu0  ;;  %v453_v48 = vpop.f32.mrf.mxu1 }
  0xcb   :  { %v210_v27 = vadd.f32 %v449_v7, %v551_v9 }
  0xcc   :  { %v118_v10 = vpop.f32.mrf.mxu0  ;;  %v134_v52 = vpop.f32.mrf.mxu1 }
  0xcd   :  { %v176_v11 = vadd.f32 %v551_v9, %v118_v10  ;;  %v244_v54 = vadd.f32 %v551_v9, %v134_v52 }
  0xce   :  { %v450_v12 = vpop.f32.mrf.mxu0  ;;  %v454_v63 = vpop.f32.mrf.mxu1 }
  0xcf   :  { %v178_v13 = vadd.f32 %v177_v8, %v176_v11  ;;  %v227_v40 = vadd.f32 %v450_v12, %v551_v9 }
  0xd0   :  { %v121_v14 = vpop.f32.mrf.mxu0  ;;  %v137_v1 = vpop.f32.mrf.mxu1 }
  0xd1   :  { %vm185_vm1 = vcmp.gt.f32.partialorder %v178_v13, 1.0  ;;  %v193_v17 = vadd.f32 %v551_v9, %v121_v14  ;;  %v196_v20 = vmul.f32 0.5, %v178_v13  ;;  %v198_v21 = vmul.f32 0.75, %v178_v13 }
  0xd2   :  { %v186_v16 = vsel %vm185_vm1, 1.0, %v491_v15  ;;  %v261_v5 = vadd.f32 %v551_v9, %v137_v1 }
  0xd3   :  { %v194_v18 = vmul.f32 %v545_v6, %v186_v16  ;;  %vm200_vm2 = vcmp.gt.f32.partialorder %v186_v16, 0.0  ;;  %v391_v25 = vadd.f32 -1.0, %v186_v16 }
  0xd5   :  { %v195_v19 = vadd.f32 %v194_v18, %v193_v17  ;;  %v205_v30 = vmax.f32 %v391_v25, 0.0 }
  0xd7   :  { %v197_v22 = vadd.f32 %v196_v20, %v195_v19  ;;  %v278_v20 = vadd.f32 %v453_v48, %v551_v9 }
  0xd9   :  { %v199_v23 = vadd.f32 %v198_v21, %v197_v22  ;;  %v213_v32 = vmul.f32 0.5, %v197_v22 }
  0xdb   :  { %v201_v24 = vsel %vm200_vm2, 0.0, %v199_v23 }
  0xdc   :  { %vm202_vm3 = vcmp.gt.f32.partialorder %v201_v24, 1.0  ;;  %v215_v35 = vmul.f32 0.75, %v201_v24 }
  0xdd   :  { %v203_v26 = vsel %vm202_vm3, 1.0, %v491_v15  ;;  %v206_v33 = vsel %vm202_vm3, 1.0, %v205_v30 }
  0xde   :  { %v211_v28 = vmul.f32 %v545_v6, %v203_v26  ;;  %v417_v29 = vpack.c.bf16 %v203_v26, %v186_v16  ;;  %vm217_vm4 = vcmp.gt.f32.partialorder %v206_v33, 0.0  ;;  %v392_v38 = vadd.f32 -1.0, %v206_v33 }
  0xdf   :  { %v295_v33 = vadd.f32 %v454_v63, %v551_v9 }
  0xe0   :  { %v212_v31 = vadd.f32 %v211_v28, %v210_v27  ;;  %418 = vst [vmem:[#allocation7] sm:$0xff] %v417_v29   ;;  %v222_v42 = vmax.f32 %v392_v38, 0.0 }
  0xe2   :  { %v214_v34 = vadd.f32 %v213_v32, %v212_v31 }
  0xe4   :  { %v216_v36 = vadd.f32 %v215_v35, %v214_v34  ;;  %v230_v44 = vmul.f32 0.5, %v214_v34 }
  0xe6   :  { %v218_v37 = vsel %vm217_vm4, 0.0, %v216_v36 }
  0xe7   :  { %vm219_vm5 = vcmp.gt.f32.partialorder %v218_v37, 1.0  ;;  %v232_v47 = vmul.f32 0.75, %v218_v37 }
  0xe8   :  { %v220_v39 = vsel %vm219_vm5, 1.0, %v491_v15  ;;  %v223_v45 = vsel %vm219_vm5, 1.0, %v222_v42 }
  0xe9   :  { %v228_v41 = vmul.f32 %v545_v6, %v220_v39  ;;  %vm234_vm6 = vcmp.gt.f32.partialorder %v223_v45, 0.0  ;;  %v393_v51 = vadd.f32 -1.0, %v223_v45 }
  0xeb   :  { %v229_v43 = vadd.f32 %v228_v41, %v227_v40  ;;  %v239_v57 = vmax.f32 %v393_v51, 0.0 }
  0xed   :  { %v231_v46 = vadd.f32 %v230_v44, %v229_v43 }
  0xef   :  { %v233_v49 = vadd.f32 %v232_v47, %v231_v46  ;;  %v247_v59 = vmul.f32 0.5, %v231_v46 }
  0xf1   :  { %v235_v50 = vsel %vm234_vm6, 0.0, %v233_v49 }
  0xf2   :  { %vm236_vm7 = vcmp.gt.f32.partialorder %v235_v50, 1.0  ;;  %v249_v62 = vmul.f32 0.75, %v235_v50 }
  0xf3   :  { %v237_v53 = vsel %vm236_vm7, 1.0, %v491_v15  ;;  %v240_v60 = vsel %vm236_vm7, 1.0, %v239_v57 }
  0xf4   :  { %v245_v55 = vmul.f32 %v545_v6, %v237_v53  ;;  %v422_v56 = vpack.c.bf16 %v237_v53, %v220_v39  ;;  %vm251_vm8 = vcmp.gt.f32.partialorder %v240_v60, 0.0  ;;  %v394_v3 = vadd.f32 -1.0, %v240_v60 }
  0xf6   :  { %v246_v58 = vadd.f32 %v245_v55, %v244_v54  ;;  %434 = vst [vmem:[#allocation7 + $0x8] sm:$0xff] %v422_v56   ;;  %v256_v8 = vmax.f32 %v394_v3, 0.0 }
  0xf8   :  { %v248_v61 = vadd.f32 %v247_v59, %v246_v58 }
  0xfa   :  { %v250_v0 = vadd.f32 %v249_v62, %v248_v61  ;;  %v264_v11 = vmul.f32 0.5, %v248_v61 }
  0xfc   :  { %v252_v2 = vsel %vm251_vm8, 0.0, %v250_v0 }
  0xfd   :  { %vm253_vm9 = vcmp.gt.f32.partialorder %v252_v2, 1.0  ;;  %v266_v14 = vmul.f32 0.75, %v252_v2 }
  0xfe   :  { %v254_v4 = vsel %vm253_vm9, 1.0, %v491_v15  ;;  %v257_v12 = vsel %vm253_vm9, 1.0, %v256_v8 }
  0xff   :  { %v262_v7 = vmul.f32 %v545_v6, %v254_v4  ;;  %vm268_vm10 = vcmp.gt.f32.partialorder %v257_v12, 0.0  ;;  %v395_v18 = vadd.f32 -1.0, %v257_v12 }
 0x101   :  { %v263_v10 = vadd.f32 %v262_v7, %v261_v5  ;;  %v273_v23 = vmax.f32 %v395_v18, 0.0 }
 0x103   :  { %v265_v13 = vadd.f32 %v264_v11, %v263_v10 }
 0x105   :  { %v267_v16 = vadd.f32 %v266_v14, %v265_v13  ;;  %v281_v25 = vmul.f32 0.5, %v265_v13 }
 0x107   :  { %v269_v17 = vsel %vm268_vm10, 0.0, %v267_v16 }
 0x108   :  { %vm270_vm11 = vcmp.gt.f32.partialorder %v269_v17, 1.0  ;;  %v283_v28 = vmul.f32 0.75, %v269_v17 }
 0x109   :  { %v271_v19 = vsel %vm270_vm11, 1.0, %v491_v15  ;;  %v274_v26 = vsel %vm270_vm11, 1.0, %v273_v23 }
 0x10a   :  { %v279_v21 = vmul.f32 %v545_v6, %v271_v19  ;;  %v427_v22 = vpack.c.bf16 %v271_v19, %v254_v4  ;;  %vm285_vm12 = vcmp.gt.f32.partialorder %v274_v26, 0.0  ;;  %v396_v31 = vadd.f32 -1.0, %v274_v26 }
 0x10c   :  { %v280_v24 = vadd.f32 %v279_v21, %v278_v20  ;;  %435 = vst [vmem:[#allocation7 + $0x10] sm:$0xff] %v427_v22   ;;  %v290_v35 = vmax.f32 %v396_v31, 0.0 }
 0x10e   :  { %v282_v27 = vadd.f32 %v281_v25, %v280_v24 }
 0x110   :  { %v284_v29 = vadd.f32 %v283_v28, %v282_v27  ;;  %v298_v37 = vmul.f32 0.5, %v282_v27 }
 0x112   :  { %v286_v30 = vsel %vm285_vm12, 0.0, %v284_v29 }
 0x113   :  { %vm287_vm13 = vcmp.gt.f32.partialorder %v286_v30, 1.0  ;;  %v300_v40 = vmul.f32 0.75, %v286_v30 }
 0x114   :  { %v288_v32 = vsel %vm287_vm13, 1.0, %v491_v15  ;;  %v291_v38 = vsel %vm287_vm13, 1.0, %v290_v35 }
 0x115   :  { %v296_v34 = vmul.f32 %v545_v6, %v288_v32  ;;  %vm302_vm14 = vcmp.gt.f32.partialorder %v291_v38, 0.0 }
 0x117   :  { %v297_v36 = vadd.f32 %v296_v34, %v295_v33 }
 0x119   :  { %v299_v39 = vadd.f32 %v298_v37, %v297_v36 }
 0x11b   :  { %v301_v41 = vadd.f32 %v300_v40, %v299_v39 }
 0x11d   :  { %v303_v42 = vsel %vm302_vm14, 0.0, %v301_v41 }
 0x11e   :  { %vm304_vm15 = vcmp.gt.f32.partialorder %v303_v42, 1.0 }
 0x11f   :  { %v305_v43 = vsel %vm304_vm15, 1.0, %v491_v15 }
 0x120   :  { %v432_v44 = vpack.c.bf16 %v305_v43, %v288_v32 }
 0x122   :  { %436 = vst [vmem:[#allocation7 + $0x18] sm:$0xff] %v432_v44  }
 0x123   :  { %480 = shalt.err (!%p477_p4)
}
 0x124   :  { %s493_s30 = smov 64   ;;  %s494_s5 = smov 4  }
 0x125   :  { %373 = dma.vmem_to_hbm [thread:$0]  %s368_s2, 512, %s583_s4, [#allocation8], %s493_s30, %s493_s30, %s494_s5  }
 0x126   :  { %489 = dma.done.wait [#allocation8], 512  }
 0x127   :  { %490 = vsyncadd [#allocation8], 4294966784 }
 0x128   :  { %377 = vsyncpa [#allocation8], 1 }

</bundles_post_ra>
